<compile_context>
chip_gen: v7x
topology: tpu7x:2x2x1
jax: 0.10.0
libtpu: 0.0.40
codegen_flags: <defaults>
</compile_context>

<pallas_src>
import jax
import jax.numpy as jnp
from jax.experimental import pallas as pl
from jax.experimental.pallas import tpu as pltpu

LANE = 128
SUBLANE = 8                    # f32 sublane count; partial sums are always f32
NSPLIT = 2                     # leading parallel grid axis (v7x has 2 TCs;
                               # harmless/sequential on v5e/v6e)
MAX_ROWS_PER_TILE = 4096       # 2 MiB f32 per input per grid step
SINGLE_BLOCK_MAX_ROWS = 2048   # below this, fuse everything into one block
VMEM_LIMIT_BYTES = 40 << 20    # 3 inputs x 2 bufs x 2 MiB + in-kernel f32 temps
                               # fits with headroom; > v5e 16 MiB default,
                               # < v7x 64 MiB physical VMEM


def _round_up(x, m):
    return ((x + m - 1) // m) * m


def _cdiv(a, b):
    return -(-a // b)


def _sublane_multiple(dtype):
    itemsize = jnp.dtype(dtype).itemsize
    return SUBLANE * max(1, 4 // max(1, itemsize))   # f32->8, bf16->16, int8->32


def _to_lanes(x):
    """Flatten to a lane-dense (rows, 128) slab in the ORIGINAL dtype.

    rows is a multiple of 8 so every block is (8,128)-aligned.  No copy in the
    common case (x.size % 1024 == 0); ragged sizes are zero-padded (zeros add
    nothing to either squared-difference sum).
    """
    flat = x.reshape(-1)
    n = flat.shape[0]
    rows = _round_up(_cdiv(n, LANE), SUBLANE)
    pad = rows * LANE - n
    if pad:
        # TODO(synk): ragged sizes still pay one pad copy; a fully pad-free path
        # would also mask partial lanes of the unpadded slab in-kernel.
        flat = jnp.pad(flat, (0, pad))
    return flat.reshape(rows, LANE)


# ----------------------------------------------------------------------------
# Kernel 1: whole problem in a single block (small inputs).  Produces the loss
# directly; margin arrives via SMEM so one compiled kernel serves any margin.
# ----------------------------------------------------------------------------
def _triplet_single_block_kernel(margin_ref, a_ref, p_ref, n_ref, out_ref):
    a = a_ref[...].astype(jnp.float32)
    dp = a - p_ref[...].astype(jnp.float32)
    dn = a - n_ref[...].astype(jnp.float32)
    pos = jnp.sqrt(jnp.sum(dp * dp, keepdims=True))
    neg = jnp.sqrt(jnp.sum(dn * dn, keepdims=True))
    out_ref[...] = jnp.maximum(pos - neg + margin_ref[0, 0], 0.0)


# ----------------------------------------------------------------------------
# Kernel 2: streaming partial-sum kernel for large inputs.
#   grid = (NSPLIT, blocks_per_split); axis 0 "parallel" (one half per
#   TensorCore on v7x), axis 1 "arbitrary" reduction over row tiles.
#   Each split accumulates (8,128) per-lane partials of sum((a-p)^2) and
#   sum((a-n)^2) straight into its own output block (no scratch); sqrt /
#   clamp / margin are finished in the wrapper over 2*2*8*128 floats.
# ----------------------------------------------------------------------------
def _make_partial_kernel(valid_rows, row_tile, blocks_per_split):
    groups = row_tile // SUBLANE

    def kernel(a_ref, p_ref, n_ref, pos_ref, neg_ref):
        c = pl.program_id(0)
        i = pl.program_id(1)

        @pl.when(i == 0)
        def _init():
            pos_ref[...] = jnp.zeros_like(pos_ref)
            neg_ref[...] = jnp.zeros_like(neg_ref)

        # Mask rows past the logical end (partial last tile / phantom tiles).
        # jnp.where (not multiply) so OOB garbage / NaN cannot leak in.
        row0 = (c * blocks_per_split + i) * row_tile
        rid = jax.lax.broadcasted_iota(jnp.int32, (row_tile, LANE), 0) + row0
        valid = rid < valid_rows

        a = a_ref[...].astype(jnp.float32)

        dp = a - p_ref[...].astype(jnp.float32)
        dp2 = jnp.where(valid, dp * dp, 0.0)
        pos_ref[...] += jnp.sum(dp2.reshape(groups, SUBLANE, LANE), axis=0)[None]

        dn = a - n_ref[...].astype(jnp.float32)
        dn2 = jnp.where(valid, dn * dn, 0.0)
        neg_ref[...] += jnp.sum(dn2.reshape(groups, SUBLANE, LANE), axis=0)[None]

    return kernel


def triplet_loss(anchor, positive, negative, margin=1.0, *,
                 max_rows_per_tile=MAX_ROWS_PER_TILE,
                 single_block_max_rows=SINGLE_BLOCK_MAX_ROWS):
    assert anchor.shape == positive.shape == negative.shape
    a2 = _to_lanes(anchor)
    p2 = _to_lanes(positive)
    n2 = _to_lanes(negative)
    rows = a2.shape[0]

    # ---- small inputs: single fused block, scalar output -------------------
    if single_block_max_rows and rows <= single_block_max_rows:
        margin_arr = jnp.full((1, 1), margin, dtype=jnp.float32)
        full_spec = pl.BlockSpec((rows, LANE), lambda i: (0, 0))
        out = pl.pallas_call(
            _triplet_single_block_kernel,
            out_shape=jax.ShapeDtypeStruct((1, 1), jnp.float32),
            grid_spec=pltpu.PrefetchScalarGridSpec(
                num_scalar_prefetch=0,
                grid=(1,),
                in_specs=[pl.BlockSpec(memory_space=pltpu.MemorySpace.SMEM),
                          full_spec, full_spec, full_spec],
                out_specs=pl.BlockSpec((1, 1), lambda i: (0, 0)),
            ),
            compiler_params=pltpu.CompilerParams(
                dimension_semantics=("arbitrary",),
                vmem_limit_bytes=VMEM_LIMIT_BYTES),
        )(margin_arr, a2, p2, n2)
        return out[0, 0]

    # ---- large inputs: tiled streaming reduction, 2-way split --------------
    sub = _sublane_multiple(a2.dtype)
    max_rows = max(sub, (max_rows_per_tile // sub) * sub)
    nb = _round_up(max(1, _cdiv(rows, max_rows)), NSPLIT)   # balanced tile count
    row_tile = _round_up(_cdiv(rows, nb), sub)
    bpc = nb // NSPLIT                                      # tiles per split
    nb_data = _cdiv(rows, row_tile)                         # tiles touching data

    def in_idx(c, i):
        # Clamp phantom trailing tiles to an in-bounds tile; the kernel masks
        # their contribution to exactly zero.
        return (jnp.minimum(c * bpc + i, nb_data - 1), 0)

    tile_spec = pl.BlockSpec((row_tile, LANE), in_idx)
    part_spec = pl.BlockSpec((1, SUBLANE, LANE), lambda c, i: (c, 0, 0))
    part_shape = jax.ShapeDtypeStruct((NSPLIT, SUBLANE, LANE), jnp.float32)

    pos_part, neg_part = pl.pallas_call(
        _make_partial_kernel(rows, row_tile, bpc),
        out_shape=(part_shape, part_shape),
        grid_spec=pltpu.PrefetchScalarGridSpec(
            num_scalar_prefetch=0,
            grid=(NSPLIT, bpc),
            in_specs=[tile_spec, tile_spec, tile_spec],
            out_specs=(part_spec, part_spec),
        ),
        compiler_params=pltpu.CompilerParams(
            dimension_semantics=("parallel", "arbitrary"),
            vmem_limit_bytes=VMEM_LIMIT_BYTES),
    )(a2, p2, n2)

    pos = jnp.sqrt(jnp.sum(pos_part))
    neg = jnp.sqrt(jnp.sum(neg_part))
    return jnp.maximum(pos - neg + margin, 0.0)


def triplet_loss_ref(anchor, positive, negative, margin=1.0):
    a = anchor.astype(jnp.float32)
    p = positive.astype(jnp.float32)
    n = negative.astype(jnp.float32)
    pos = jnp.sqrt(jnp.sum((a - p) ** 2))
    neg = jnp.sqrt(jnp.sum((a - n) ** 2))
    return jnp.maximum(pos - neg + margin, 0.0)


def _check(name, got, want, rtol=1e-3, atol=1e-3):
    got = jax.block_until_ready(got)
    # pos/neg distances nearly cancel in the loss, so small f32 reduction-order
    # differences show up as ~1e-4 absolute; use a cancellation-aware tolerance.
    assert jnp.allclose(got, want, rtol=rtol, atol=atol), (name, got, want)


if __name__ == "__main__":
    # 1) Primary check (module-implied shape): NCHW feature maps (2,4,16,16),
    #    f32, single-block fused kernel.
    ka, kp, kn = jax.random.split(jax.random.PRNGKey(0), 3)
    shape = (2, 4, 16, 16)
    anchor = jax.random.normal(ka, shape, dtype=jnp.float32)
    positive = jax.random.normal(kp, shape, dtype=jnp.float32)
    negative = jax.random.normal(kn, shape, dtype=jnp.float32)
    loss = triplet_loss(anchor, positive, negative, margin=1.0)
    loss = jax.block_until_ready(loss)
    _check("single_block", loss, triplet_loss_ref(anchor, positive, negative, 1.0))

    # 2) Tiled/streaming path with a partial tail tile and a phantom
    #    (fully-masked) tile, forced via tiny tiles so the test stays small.
    k2 = jax.random.split(jax.random.PRNGKey(1), 3)
    shape2 = (5, 8, 128)   # 5120 elems -> 40 rows; row_tile=16 -> partial tile
    a2 = jax.random.normal(k2[0], shape2, dtype=jnp.float32)
    p2 = jax.random.normal(k2[1], shape2, dtype=jnp.float32)
    n2 = jax.random.normal(k2[2], shape2, dtype=jnp.float32)
    loss2 = triplet_loss(a2, p2, n2, margin=0.5,
                         max_rows_per_tile=16, single_block_max_rows=0)
    _check("tiled_masked", loss2, triplet_loss_ref(a2, p2, n2, 0.5))

    # 3) bf16 inputs through the tiled path (native bf16 HBM reads, f32 math).
    k3 = jax.random.split(jax.random.PRNGKey(2), 3)
    a3 = jax.random.normal(k3[0], shape, dtype=jnp.bfloat16)
    p3 = jax.random.normal(k3[1], shape, dtype=jnp.bfloat16)
    n3 = jax.random.normal(k3[2], shape, dtype=jnp.bfloat16)
    loss3 = triplet_loss(a3, p3, n3, margin=1.0,
                         max_rows_per_tile=16, single_block_max_rows=0)
    _check("tiled_bf16", loss3, triplet_loss_ref(a3, p3, n3, 1.0))

    print("KERNEL_OK")
</pallas_src>

<mosaic_0001>
module attributes {stable_mosaic.version = 11 : i64} {
  func.func @_triplet_single_block_kernel(%arg0: i32, %arg1: memref<1x1xf32, #tpu.memory_space<smem>>, %arg2: memref<16x128xf32, #tpu.memory_space<vmem>>, %arg3: memref<16x128xf32, #tpu.memory_space<vmem>>, %arg4: memref<16x128xf32, #tpu.memory_space<vmem>>, %arg5: memref<1x1xf32, #tpu.memory_space<vmem>>) attributes {dimension_semantics = [#tpu.dimension_semantics<arbitrary>], iteration_bounds = array<i64: 1>, scalar_prefetch = 0 : i64, scratch_operands = 0 : i64, tpu.core_type = #tpu.core_type<tc>, window_params = [{transform_indices = @transform_0, window_bounds = array<i64: 1, 1>}, {pipeline_mode = #tpu.pipeline_mode<synchronous>, transform_indices = @transform_1, window_bounds = array<i64: 16, 128>}, {pipeline_mode = #tpu.pipeline_mode<synchronous>, transform_indices = @transform_2, window_bounds = array<i64: 16, 128>}, {pipeline_mode = #tpu.pipeline_mode<synchronous>, transform_indices = @transform_3, window_bounds = array<i64: 16, 128>}, {pipeline_mode = #tpu.pipeline_mode<synchronous>, transform_indices = @transform_4, window_bounds = array<i64: 1, 1>}]} {
    %c0 = arith.constant 0 : index
    %c0_0 = arith.constant 0 : index
    %0 = vector.load %arg2[%c0, %c0_0] : memref<16x128xf32, #tpu.memory_space<vmem>>, vector<16x128xf32>
    %c0_1 = arith.constant 0 : index
    %c0_2 = arith.constant 0 : index
    %1 = vector.load %arg3[%c0_1, %c0_2] : memref<16x128xf32, #tpu.memory_space<vmem>>, vector<16x128xf32>
    %2 = arith.subf %0, %1 : vector<16x128xf32>
    %c0_3 = arith.constant 0 : index
    %c0_4 = arith.constant 0 : index
    %3 = vector.load %arg4[%c0_3, %c0_4] : memref<16x128xf32, #tpu.memory_space<vmem>>, vector<16x128xf32>
    %4 = arith.subf %0, %3 : vector<16x128xf32>
    %5 = arith.mulf %2, %2 : vector<16x128xf32>
    %6 = vector.shape_cast %5 : vector<16x128xf32> to vector<1x16x128xf32>
    %cst = arith.constant dense<0.000000e+00> : vector<1xf32>
    %7 = vector.multi_reduction <add>, %6, %cst [1, 2] : vector<1x16x128xf32> to vector<1xf32>
    %8 = vector.shape_cast %7 : vector<1xf32> to vector<1x1x1xf32>
    %9 = vector.extract %8[0, 0, 0] : f32 from vector<1x1x1xf32>
    %10 = vector.broadcast %9 : f32 to vector<1x1xf32>
    %11 = math.sqrt %10 : vector<1x1xf32>
    %12 = arith.mulf %4, %4 : vector<16x128xf32>
    %13 = vector.shape_cast %12 : vector<16x128xf32> to vector<1x16x128xf32>
    %cst_5 = arith.constant dense<0.000000e+00> : vector<1xf32>
    %14 = vector.multi_reduction <add>, %13, %cst_5 [1, 2] : vector<1x16x128xf32> to vector<1xf32>
    %15 = vector.shape_cast %14 : vector<1xf32> to vector<1x1x1xf32>
    %16 = vector.extract %15[0, 0, 0] : f32 from vector<1x1x1xf32>
    %17 = vector.broadcast %16 : f32 to vector<1x1xf32>
    %18 = math.sqrt %17 : vector<1x1xf32>
    %19 = arith.subf %11, %18 : vector<1x1xf32>
    %c0_6 = arith.constant 0 : index
    %c0_7 = arith.constant 0 : index
    %20 = memref.load %arg1[%c0_6, %c0_7] : memref<1x1xf32, #tpu.memory_space<smem>>
    %21 = vector.broadcast %20 : f32 to vector<1x1xf32>
    %22 = arith.addf %19, %21 : vector<1x1xf32>
    %cst_8 = arith.constant 0.000000e+00 : f32
    %23 = vector.broadcast %cst_8 : f32 to vector<1x1xf32>
    %24 = arith.maximumf %22, %23 : vector<1x1xf32>
    %c0_9 = arith.constant 0 : index
    %c0_10 = arith.constant 0 : index
    %25 = vector.load %arg5[%c0_9, %c0_10] : memref<1x1xf32, #tpu.memory_space<vmem>>, vector<1x1xf32>
    tpu.vector_store %arg5[%c0_9, %c0_10], %24 {strides = array<i32>} : memref<1x1xf32, #tpu.memory_space<vmem>>, vector<1x1xf32>,
    return
  }
  func.func @transform_0(%arg0: i32) -> (i32, i32) {
    %c0_i32 = arith.constant 0 : i32
    %c0_i32_0 = arith.constant 0 : i32
    %c0_i32_1 = arith.constant 0 : i32
    return %c0_i32, %c0_i32_0 : i32, i32
  }
  func.func @transform_1(%arg0: i32) -> (i32, i32) {
    %c0_i32 = arith.constant 0 : i32
    %c0_i32_0 = arith.constant 0 : i32
    %c0_i32_1 = arith.constant 0 : i32
    return %c0_i32, %c0_i32_0 : i32, i32
  }
  func.func @transform_2(%arg0: i32) -> (i32, i32) {
    %c0_i32 = arith.constant 0 : i32
    %c0_i32_0 = arith.constant 0 : i32
    %c0_i32_1 = arith.constant 0 : i32
    return %c0_i32, %c0_i32_0 : i32, i32
  }
  func.func @transform_3(%arg0: i32) -> (i32, i32) {
    %c0_i32 = arith.constant 0 : i32
    %c0_i32_0 = arith.constant 0 : i32
    %c0_i32_1 = arith.constant 0 : i32
    return %c0_i32, %c0_i32_0 : i32, i32
  }
  func.func @transform_4(%arg0: i32) -> (i32, i32) {
    %c0_i32 = arith.constant 0 : i32
    %c0_i32_0 = arith.constant 0 : i32
    %c0_i32_1 = arith.constant 0 : i32
    return %c0_i32, %c0_i32_0 : i32, i32
  }
}

</mosaic_0001>

<bundles_post_ra>
// kernel: tpu_custom_call.1
= control target key start
LH: loop header
LB: loop body
LE: loop exit
PB: predicated region body
PF: predicated region fallthrough
CT: control target
= control target key end

     0   :  { %10 = vsyncpa [#allocation4], 0  ;;  %s339_s0 = inlined_call_operand.<no memory space> [shape: f32[1,1], index: 0, kind: input, shape index: {}]   ;;  %s340_s1 = inlined_call_operand.hbm [shape: f32[16,128], index: 1, kind: input, shape index: {}]   ;;  %s341_s2 = inlined_call_operand.hbm [shape: f32[16,128], index: 2, kind: input, shape index: {}]   ;;  %s342_s3 = inlined_call_operand.hbm [shape: f32[16,128], index: 3, kind: input, shape index: {}]   ;;  %s343_s4 = inlined_call_operand.hbm [shape: f32[1,1], index: 4, kind: output, shape index: {}]  }
   0x1   :  { %11 = vsyncpa [#allocation7], 0 }
   0x2   :  { %12 = vsyncpa [#allocation5], 0  ;;  %s241_s15 = smov [#allocation6]   ;;  %s242_s17 = smov [#allocation3]  }
   0x3   :  { %s32_s16 = sshll.u32 %s241_s15, 4  ;;  %s20_s18 = sshll.u32 %s242_s17, 4  ;;  %s33_s16 = int_to_ptr.vmem [resolvable:$true] %s32_s16  ;;  %s272_s18 = int_to_ptr.vmem [resolvable:$true] %s20_s18 }
   0x4   :  { %s147_s21 = scalar_lea.hbm %s341_s2, 256 }
   0x5   :  { %p148_p0 = scmp.ne.s32.totalorder %s341_s2, %s147_s21  ;;  %p151_p1 = scmp.lt.u32.totalorder %s147_s21, %s341_s2 }
   0x7   :  { %p153_p2 = pnand %p151_p1, %p148_p0 }
   0x9   :  { %156 = shalt.err (!%p153_p2)
}
   0xa   :  { %s157_s26 = scalar_lea.vmem %s33_s16, 256  ;;  %p162_p4 = scmp.lt.s32.totalorder %s33_s16, %s33_s16 }
   0xb   :  { %p158_p3 = scmp.ne.s32.totalorder %s33_s16, %s157_s26  ;;  %p163_p5 = scmp.lt.s32.totalorder %s157_s26, %s157_s26 }
   0xd   :  { %p164_p6 = por %p163_p5, %p162_p4 }
   0xf   :  { %p165_p7 = pnand %p164_p6, %p158_p3 }
  0x11   :  { %168 = shalt.err (!%p165_p7)
}
  0x12   :  { %s243_s27 = smov 128   ;;  %s244_s28 = smov 8  }
  0x13   :  { %38 = dma.hbm_to_vmem [thread:$0]  %s341_s2, 256, %s33_s16, [#allocation7], %s243_s27, %s243_s27, %s244_s28  }
  0x14   :  { %s169_s7 = scalar_lea.hbm %s340_s1, 256 }
  0x15   :  { %p170_p8 = scmp.ne.s32.totalorder %s340_s1, %s169_s7  ;;  %p173_p9 = scmp.lt.u32.totalorder %s169_s7, %s340_s1 }
  0x17   :  { %p175_p10 = pnand %p173_p9, %p170_p8 }
  0x19   :  { %178 = shalt.err (!%p175_p10)
}
  0x1a   :  { %s179_s12 = scalar_lea.vmem %s272_s18, 256  ;;  %p184_p12 = scmp.lt.s32.totalorder %s272_s18, %s272_s18 }
  0x1b   :  { %p180_p11 = scmp.ne.s32.totalorder %s272_s18, %s179_s12  ;;  %p185_p13 = scmp.lt.s32.totalorder %s179_s12, %s179_s12 }
  0x1d   :  { %p186_p0 = por %p185_p13, %p184_p12 }
  0x1f   :  { %p187_p1 = pnand %p186_p0, %p180_p11 }
  0x21   :  { %190 = shalt.err (!%p187_p1)
}
  0x22   :  { %26 = dma.hbm_to_vmem [thread:$0]  %s340_s1, 256, %s272_s18, [#allocation4], %s243_s27, %s243_s27, %s244_s28  }
  0x23   :  { %s245_s14 = smov [#allocation8]   ;;  %s191_s19 = scalar_lea.hbm %s342_s3, 256 }
  0x24   :  { %s44_s15 = sshll.u32 %s245_s14, 4  ;;  %p192_p2 = scmp.ne.s32.totalorder %s342_s3, %s191_s19  ;;  %s45_s15 = int_to_ptr.vmem [resolvable:$true] %s44_s15 }
  0x25   :  { %p195_p3 = scmp.lt.u32.totalorder %s191_s19, %s342_s3 }
  0x27   :  { %p197_p4 = pnand %p195_p3, %p192_p2 }
  0x29   :  { %200 = shalt.err (!%p197_p4)
}
  0x2a   :  { %s201_s24 = scalar_lea.vmem %s45_s15, 256  ;;  %p206_p6 = scmp.lt.s32.totalorder %s45_s15, %s45_s15 }
  0x2b   :  { %p202_p5 = scmp.ne.s32.totalorder %s45_s15, %s201_s24  ;;  %p207_p7 = scmp.lt.s32.totalorder %s201_s24, %s201_s24 }
  0x2d   :  { %p208_p8 = por %p207_p7, %p206_p6 }
  0x2f   :  { %p209_p9 = pnand %p208_p8, %p202_p5 }
  0x31   :  { %212 = shalt.err (!%p209_p9)
}
  0x32   :  { %50 = dma.hbm_to_vmem [thread:$0]  %s342_s3, 256, %s45_s15, [#allocation7], %s243_s27, %s243_s27, %s244_s28  }
  0x33   :  { %235 = dma.done.wait [#allocation4], 256  }
  0x34   :  { %236 = vsyncadd [#allocation4], 4294967040 }
  0x35   :  { %237 = dma.done.wait [#allocation7], 512  }
  0x36   :  { %238 = vsyncadd [#allocation7], 4294966784  ;;  %v60_v0 = vld [vmem:[#allocation3] sm:$0xff]  ;;  %v61_v1 = vld [vmem:[#allocation3 + $0x8] sm:$0xff]  ;;  %v112_v42 = vstv %s339_s0  ;;  %s246_s28 = smov [#allocation9]   ;;  %vm115_vm4 = vcmask 0  }
  0x37   :  { %v62_v2 = vld [vmem:[#allocation6] sm:$0xff]  ;;  %v63_v3 = vld [vmem:[#allocation6 + $0x8] sm:$0xff]  ;;  %v66_v5 = vld [vmem:[#allocation8] sm:$0xff]  ;;  %s123_s29 = sshll.u32 %s246_s28, 4  ;;  %s124_s29 = int_to_ptr.vmem [resolvable:$true] %s123_s29 }
  0x38   :  { %v64_v4 = vsub.f32 %v60_v0, %v62_v2  ;;  %v67_v6 = vld [vmem:[#allocation8 + $0x8] sm:$0xff]  ;;  %v65_v7 = vsub.f32 %v61_v1, %v63_v3  ;;  %v68_v8 = vsub.f32 %v60_v0, %v66_v5  ;;  %s213_s30 = scalar_lea.vmem %s124_s29, 16  ;;  %s217_s5 = scalar_lea.vmem %s124_s29, 32 }
  0x39   :  { %v69_v9 = vsub.f32 %v61_v1, %v67_v6  ;;  %p214_p10 = scmp.ne.s32.totalorder %s124_s29, %s213_s30  ;;  %p218_p11 = scmp.lt.s32.totalorder %s124_s29, %s124_s29 }
  0x3a   :  { %v70_v10 = vmul.f32 %v64_v4, %v64_v4  ;;  %v71_v11 = vmul.f32 %v65_v7, %v65_v7  ;;  %v90_v12 = vmul.f32 %v68_v8, %v68_v8  ;;  %p219_p12 = scmp.lt.s32.totalorder %s217_s5, %s213_s30 }
  0x3b   :  { %v91_v13 = vmul.f32 %v69_v9, %v69_v9 }
  0x3c   :  { %v72_v14 = vadd.f32 %v71_v11, %v70_v10  ;;  %p220_p13 = por %p219_p12, %p218_p11 }
  0x3d   :  { %v92_v15 = vadd.f32 %v91_v13, %v90_v12 }
  0x3e   :  { %73 = vadd.xlane.f32.xlu0 %v72_v14  ;;  %p221_p0 = pnand %p220_p13, %p214_p10 }
  0x42   :  { %93 = vadd.xlane.f32.xlu0 %v92_v15 }
  0xcb   :  { %v74_v16 = vpop.xlane.xlu0 %73 }
  0xcc   :  { %v75_v17 = vrot.slane %v74_v16, 4 }
  0xce   :  { %v76_v18 = vadd.f32 %v75_v17, %v74_v16 }
  0xcf   :  { %v94_v19 = vpop.xlane.xlu0 %93 }
  0xd0   :  { %v77_v20 = vrot.slane %v76_v18, 2  ;;  %v95_v21 = vrot.slane %v94_v19, 4 }
  0xd2   :  { %v96_v22 = vadd.f32 %v95_v21, %v94_v19  ;;  %v78_v23 = vadd.f32 %v77_v20, %v76_v18 }
  0xd4   :  { %v97_v24 = vrot.slane %v96_v22, 2  ;;  %v79_v25 = vrot.slane %v78_v23, 1 }
  0xd6   :  { %v98_v26 = vadd.f32 %v97_v24, %v96_v22  ;;  %v80_v27 = vadd.f32 %v79_v25, %v78_v23 }
  0xd8   :  { %133 = vpush %v80_v27  ;;  %v99_v28 = vrot.slane %v98_v26, 1 }
  0xda   :  { %v100_v29 = vadd.f32 %v99_v28, %v98_v26 }
  0xdc   :  { %135 = vpush %v100_v29 }
 0x109   :  { %s134_s3 = spop %133 }
 0x10a   :  { %v82_v30 = vstv %s134_s3 }
 0x10b   :  { %143 = vrsqrt.f32 %v82_v30  ;;  %vm85_vm0 = vcmp.eq.f32.partialorder %v82_v30, inf  ;;  %v88_v37 = vand.u32 2147483648, %v82_v30  ;;  %vm87_vm2 = vcmp.eq.f32.partialorder %v82_v30, 0.0 }
 0x10d   :  { %s136_s25 = spop %135 }
 0x10e   :  { %v102_v31 = vstv %s136_s25 }
 0x10f   :  { %145 = vrsqrt.f32 %v102_v31  ;;  %vm105_vm1 = vcmp.eq.f32.partialorder %v102_v31, inf  ;;  %v108_v38 = vand.u32 2147483648, %v102_v31  ;;  %vm107_vm3 = vcmp.eq.f32.partialorder %v102_v31, 0.0 }
 0x115   :  { %v144_v32 = vpop.eup %143 }
 0x116   :  { %v84_v33 = vmul.f32 %v144_v32, %v82_v30 }
 0x118   :  { %v86_v35 = vsel %vm85_vm0, %v82_v30, %v84_v33 }
 0x119   :  { %v146_v34 = vpop.eup %145  ;;  %v89_v40 = vsel %vm87_vm2, %v88_v37, %v86_v35 }
 0x11a   :  { %v104_v36 = vmul.f32 %v146_v34, %v102_v31 }
 0x11c   :  { %v106_v39 = vsel %vm105_vm1, %v102_v31, %v104_v36 }
 0x11d   :  { %v109_v41 = vsel %vm107_vm3, %v108_v38, %v106_v39 }
 0x11e   :  { %v110_v43 = vsub.f32 %v89_v40, %v109_v41 }
 0x120   :  { %v113_v44 = vadd.f32 %v112_v42, %v110_v43 }
 0x122   :  { %v114_v45 = vmax.f32 %v113_v44, 0.0 }
 0x124   :  { %116 = vst.msk [vmem:[#allocation9] sm:$0x1] %vm115_vm4, %v114_v45 }
 0x125   :  { %224 = shalt.err (!%p221_p0)
}
 0x126   :  { %s225_s0 = scalar_lea.hbm %s343_s4, 16 }
 0x127   :  { %p226_p1 = scmp.ne.s32.totalorder %s343_s4, %s225_s0  ;;  %p229_p2 = scmp.lt.u32.totalorder %s225_s0, %s343_s4 }
 0x129   :  { %p231_p3 = pnand %p229_p2, %p226_p1 }
 0x12b   :  { %234 = shalt.err (!%p231_p3)
}
 0x12c   :  { %126 = dma.vmem_to_hbm [thread:$0]  %s124_s29, 16, %s343_s4, [#allocation5]  }
 0x12d   :  { %239 = dma.done.wait [#allocation5], 16  }
 0x12e   :  { %240 = vsyncadd [#allocation5], 4294967280 }
 0x12f   :  { %130 = vsyncpa [#allocation4], 1 }
 0x130   :  { %131 = vsyncpa [#allocation7], 1 }
 0x131   :  { %132 = vsyncpa [#allocation5], 1 }

</bundles_post_ra>
